<compile_context>
chip_gen: v6e
topology: v6e:2x2x1
jax: 0.10.0
libtpu: 0.0.40
codegen_flags: <defaults>
</compile_context>

<pallas_src>
import functools

import jax
import jax.numpy as jnp
from jax.experimental import pallas as pl
from jax.experimental.pallas import tpu as pltpu


# ----------------------------------------------------------------------------
# Fused single-pass kernel: pool + fc + scale on a (Bt, C, HW) slab.
# ----------------------------------------------------------------------------
def _se_fused_kernel(x_ref, w1t_ref, w2t_ref, o_ref):
    # AdaptiveAvgPool2d(1): cross-lane sum with f32 accumulation.  The 1/(H*W)
    # factor is folded into w1t by the wrapper.
    pooled = jnp.sum(x_ref[...], axis=-1, dtype=jnp.float32)            # (Bt, C)

    # fc: Linear(C->C/r, no bias) -> ReLU -> Linear(C/r->C, no bias) -> Sigmoid.
    h = jnp.maximum(
        jnp.dot(pooled, w1t_ref[...], preferred_element_type=jnp.float32), 0.0)
    s = jax.nn.sigmoid(
        jnp.dot(h, w2t_ref[...], preferred_element_type=jnp.float32))   # (Bt, C)

    # x * y.expand_as(x): re-read the resident block, fused multiply + store.
    o_ref[...] = x_ref[...] * s[:, :, None].astype(o_ref.dtype)


# ----------------------------------------------------------------------------
# Two-pass fallback kernels (spatially tiled) for very large per-batch slabs.
# ----------------------------------------------------------------------------
def _pool_sum_kernel(x_ref, sum_ref, *, hw, hw_blk):
    j = pl.program_id(1)

    @pl.when(j == 0)
    def _():
        sum_ref[...] = jnp.zeros_like(sum_ref)

    x = x_ref[...]                                                       # (1, C, hw_blk)
    # Mask the ragged spatial tail (OOB reads are undefined).
    col = jax.lax.broadcasted_iota(jnp.int32, x.shape, 2) + j * hw_blk
    x = jnp.where(col < hw, x, 0)
    sum_ref[...] += jnp.sum(x, axis=-1, keepdims=True, dtype=jnp.float32)


def _scale_kernel(x_ref, s_ref, o_ref):
    o_ref[...] = x_ref[...] * s_ref[...].astype(o_ref.dtype)


# ----------------------------------------------------------------------------
# Wrappers.
# ----------------------------------------------------------------------------
def _pick_block_b(b, row_bytes, max_block_bytes):
    """Largest divisor of b whose block fits the budget while keeping >= min(b, 4) steps."""
    best = 1
    min_steps = min(b, 4)
    for d in range(1, b + 1):
        if b % d:
            continue
        if d * row_bytes <= max_block_bytes and b // d >= min_steps:
            best = max(best, d)
    return best


def _se_fused(x_flat, w1t, w2t, b, c, hw, row_bytes, max_block_bytes):
    block_b = _pick_block_b(b, row_bytes, max_block_bytes)
    n_steps = b // block_b
    block_bytes = block_b * row_bytes
    vmem_limit = int(min(40 * 1024 * 1024,
                         max(24 * 1024 * 1024, 4 * block_bytes + (4 << 20))))

    return pl.pallas_call(
        _se_fused_kernel,
        out_shape=jax.ShapeDtypeStruct((b, c, hw), x_flat.dtype),
        grid_spec=pl.GridSpec(
            grid=(n_steps,),
            in_specs=[
                pl.BlockSpec((block_b, c, hw), lambda i: (i, 0, 0)),
                pl.BlockSpec(w1t.shape, lambda i: (0, 0)),
                pl.BlockSpec(w2t.shape, lambda i: (0, 0)),
            ],
            out_specs=pl.BlockSpec((block_b, c, hw), lambda i: (i, 0, 0)),
        ),
        compiler_params=pltpu.CompilerParams(
            dimension_semantics=("parallel",),
            vmem_limit_bytes=vmem_limit,
        ),
    )(x_flat, w1t, w2t)


def _se_two_pass(x_flat, w1t, w2t, b, c, hw, itemsize, max_block_bytes):
    # Spatial tile: multiple of 128 lanes, a few MiB per block.
    target = min(max_block_bytes, 4 * 1024 * 1024)
    hw_blk = max(128, (target // (c * itemsize)) // 128 * 128)
    if hw_blk >= hw:
        hw_blk = hw
    n_hw = pl.cdiv(hw, hw_blk)
    block_bytes = c * hw_blk * itemsize
    vmem_limit = int(min(40 * 1024 * 1024,
                         max(24 * 1024 * 1024, 4 * block_bytes + (4 << 20))))
    # TODO(synk): if C alone is so large that a (1, C, 128) block exceeds the
    # budget, also tile the channel axis (not needed for typical SE shapes).

    # Pass 1: pooled sums; the spatial grid axis is a masked reduction.
    sums = pl.pallas_call(
        functools.partial(_pool_sum_kernel, hw=hw, hw_blk=hw_blk),
        out_shape=jax.ShapeDtypeStruct((b, c, 1), jnp.float32),
        grid_spec=pl.GridSpec(
            grid=(b, n_hw),
            in_specs=[pl.BlockSpec((1, c, hw_blk), lambda i, j: (i, 0, j))],
            out_specs=pl.BlockSpec((1, c, 1), lambda i, j: (i, 0, 0)),
        ),
        compiler_params=pltpu.CompilerParams(
            dimension_semantics=("parallel", "arbitrary"),
            vmem_limit_bytes=vmem_limit,
        ),
    )(x_flat)

    # Tiny (B, C) fc in plain JAX: negligible next to the two HBM passes over x.
    y = sums[:, :, 0]                                        # (B, C) f32; 1/HW in w1t
    hdn = jnp.maximum(jnp.dot(y, w1t, preferred_element_type=jnp.float32), 0.0)
    s = jax.nn.sigmoid(jnp.dot(hdn, w2t, preferred_element_type=jnp.float32))
    s3 = s[:, :, None].astype(x_flat.dtype)                  # (B, C, 1)

    # Pass 2: stream x again and apply the per-channel scale.
    return pl.pallas_call(
        _scale_kernel,
        out_shape=jax.ShapeDtypeStruct((b, c, hw), x_flat.dtype),
        grid_spec=pl.GridSpec(
            grid=(b, n_hw),
            in_specs=[
                pl.BlockSpec((1, c, hw_blk), lambda i, j: (i, 0, j)),
                pl.BlockSpec((1, c, 1), lambda i, j: (i, 0, 0)),
            ],
            out_specs=pl.BlockSpec((1, c, hw_blk), lambda i, j: (i, 0, j)),
        ),
        compiler_params=pltpu.CompilerParams(
            dimension_semantics=("parallel", "parallel"),
            vmem_limit_bytes=vmem_limit,
        ),
    )(x_flat, s3)


def se_layer(x, w1, w2, *, max_block_bytes=8 * 1024 * 1024):
    """Squeeze-and-excitation.  x: (B, C, H, W); w1: (C//r, C); w2: (C, C//r)."""
    b, c, h, w = x.shape
    hw = h * w
    itemsize = jnp.dtype(x.dtype).itemsize
    row_bytes = c * hw * itemsize                    # one batch element's slab

    x_flat = x.reshape(b, c, hw)                     # free collapse, no extra HBM pass
    w1t = (w1.T * (1.0 / hw)).astype(jnp.float32)    # (C, Cr); fold 1/(H*W) here
    w2t = w2.T.astype(jnp.float32)                   # (Cr, C)

    if row_bytes <= max_block_bytes:
        out_flat = _se_fused(x_flat, w1t, w2t, b, c, hw, row_bytes, max_block_bytes)
    else:
        out_flat = _se_two_pass(x_flat, w1t, w2t, b, c, hw, itemsize, max_block_bytes)
    return out_flat.reshape(b, c, h, w)


def se_layer_ref(x, w1, w2):
    y = jnp.mean(x, axis=(2, 3))                     # (B, C)
    y = jnp.maximum(y @ w1.T, 0.0)                   # (B, C//r)
    y = jax.nn.sigmoid(y @ w2.T)                     # (B, C)
    return x * y[:, :, None, None]


if __name__ == "__main__":
    key = jax.random.PRNGKey(0)
    cases = [
        dict(B=2, C=64, H=16, W=16, r=16, kw={}),            # lane-dense, 2 steps
        dict(B=3, C=32, H=7, W=7, r=16, kw={}),               # ragged lanes (hw=49)
        dict(B=8, C=16, H=8, W=8, r=8, kw={}),                # block_b=2, 4 steps
        dict(B=2, C=16, H=20, W=20, r=8,
             kw=dict(max_block_bytes=8 * 1024)),              # force two-pass fallback
    ]
    for cfg in cases:
        B, C, H, W, r = cfg["B"], cfg["C"], cfg["H"], cfg["W"], cfg["r"]
        Cr = C // r
        key, kx, k1, k2 = jax.random.split(key, 4)
        x = jax.random.normal(kx, (B, C, H, W), dtype=jnp.float32)
        # nn.Linear weights: (out, in), bias=False.
        w1 = jax.random.normal(k1, (Cr, C), dtype=jnp.float32) * (1.0 / jnp.sqrt(C))
        w2 = jax.random.normal(k2, (C, Cr), dtype=jnp.float32) * (1.0 / jnp.sqrt(Cr))

        out = jax.block_until_ready(se_layer(x, w1, w2, **cfg["kw"]))
        ref = se_layer_ref(x, w1, w2)
        assert out.shape == x.shape
        assert jnp.allclose(out, ref, atol=1e-5, rtol=1e-5), f"mismatch for {cfg}"

    print("KERNEL_OK")
</pallas_src>

<mosaic_0001>
module attributes {stable_mosaic.version = 11 : i64} {
  func.func @_se_fused_kernel(%arg0: i32, %arg1: memref<1x64x256xf32, #tpu.memory_space<vmem>>, %arg2: memref<64x4xf32, #tpu.memory_space<vmem>>, %arg3: memref<4x64xf32, #tpu.memory_space<vmem>>, %arg4: memref<1x64x256xf32, #tpu.memory_space<vmem>>) attributes {dimension_semantics = [#tpu.dimension_semantics<parallel>], iteration_bounds = array<i64: 2>, scalar_prefetch = 0 : i64, scratch_operands = 0 : i64, tpu.core_type = #tpu.core_type<tc>, window_params = [{transform_indices = @transform_0, window_bounds = array<i64: 1, 64, 256>}, {pipeline_mode = #tpu.pipeline_mode<synchronous>, transform_indices = @transform_1, window_bounds = array<i64: 64, 4>}, {pipeline_mode = #tpu.pipeline_mode<synchronous>, transform_indices = @transform_2, window_bounds = array<i64: 4, 64>}, {transform_indices = @transform_3, window_bounds = array<i64: 1, 64, 256>}]} {
    %c0 = arith.constant 0 : index
    %c0_0 = arith.constant 0 : index
    %c0_1 = arith.constant 0 : index
    %0 = vector.load %arg1[%c0, %c0_0, %c0_1] : memref<1x64x256xf32, #tpu.memory_space<vmem>>, vector<1x64x256xf32>
    %cst = arith.constant dense<0.000000e+00> : vector<1x64xf32>
    %1 = vector.multi_reduction <add>, %0, %cst [2] : vector<1x64x256xf32> to vector<1x64xf32>
    %c0_2 = arith.constant 0 : index
    %c0_3 = arith.constant 0 : index
    %2 = vector.load %arg2[%c0_2, %c0_3] : memref<64x4xf32, #tpu.memory_space<vmem>>, vector<64x4xf32>
    %cst_4 = arith.constant dense<0.000000e+00> : vector<1x4xf32>
    %3 = tpu.matmul %1, %2, %cst_4 {dimension_numbers = #tpu.dot_dimension_numbers<[1], [0], [0], [1], [0, 0, 1, 1], [], []>} : vector<1x64xf32>, vector<64x4xf32>, vector<1x4xf32> -> vector<1x4xf32>
    %cst_5 = arith.constant 0.000000e+00 : f32
    %4 = vector.broadcast %cst_5 : f32 to vector<1x4xf32>
    %5 = arith.maximumf %3, %4 : vector<1x4xf32>
    %c0_6 = arith.constant 0 : index
    %c0_7 = arith.constant 0 : index
    %6 = vector.load %arg3[%c0_6, %c0_7] : memref<4x64xf32, #tpu.memory_space<vmem>>, vector<4x64xf32>
    %cst_8 = arith.constant dense<0.000000e+00> : vector<1x64xf32>
    %7 = tpu.matmul %5, %6, %cst_8 {dimension_numbers = #tpu.dot_dimension_numbers<[1], [0], [0], [1], [0, 0, 1, 1], [], []>} : vector<1x4xf32>, vector<4x64xf32>, vector<1x64xf32> -> vector<1x64xf32>
    %8 = arith.negf %7 : vector<1x64xf32>
    %9 = math.exp %8 : vector<1x64xf32>
    %cst_9 = arith.constant 1.000000e+00 : f32
    %10 = vector.broadcast %cst_9 : f32 to vector<1x64xf32>
    %11 = arith.addf %10, %9 : vector<1x64xf32>
    %12 = arith.divf %10, %11 : vector<1x64xf32>
    %c0_10 = arith.constant 0 : index
    %c0_11 = arith.constant 0 : index
    %c0_12 = arith.constant 0 : index
    %13 = vector.load %arg1[%c0_10, %c0_11, %c0_12] : memref<1x64x256xf32, #tpu.memory_space<vmem>>, vector<1x64x256xf32>
    %14 = vector.shape_cast %12 : vector<1x64xf32> to vector<1x64x1xf32>
    %15 = vector.broadcast %14 : vector<1x64x1xf32> to vector<1x64x256xf32>
    %16 = arith.mulf %13, %15 : vector<1x64x256xf32>
    %c0_13 = arith.constant 0 : index
    %c0_14 = arith.constant 0 : index
    %c0_15 = arith.constant 0 : index
    %17 = vector.load %arg4[%c0_13, %c0_14, %c0_15] : memref<1x64x256xf32, #tpu.memory_space<vmem>>, vector<1x64x256xf32>
    tpu.vector_store %arg4[%c0_13, %c0_14, %c0_15], %16 {strides = array<i32>} : memref<1x64x256xf32, #tpu.memory_space<vmem>>, vector<1x64x256xf32>,
    return
  }
  func.func @transform_0(%arg0: i32) -> (i32, i32, i32) {
    %c0_i32 = arith.constant 0 : i32
    %c0_i32_0 = arith.constant 0 : i32
    %c0_i32_1 = arith.constant 0 : i32
    return %arg0, %c0_i32, %c0_i32_0 : i32, i32, i32
  }
  func.func @transform_1(%arg0: i32) -> (i32, i32) {
    %c0_i32 = arith.constant 0 : i32
    %c0_i32_0 = arith.constant 0 : i32
    %c0_i32_1 = arith.constant 0 : i32
    return %c0_i32, %c0_i32_0 : i32, i32
  }
  func.func @transform_2(%arg0: i32) -> (i32, i32) {
    %c0_i32 = arith.constant 0 : i32
    %c0_i32_0 = arith.constant 0 : i32
    %c0_i32_1 = arith.constant 0 : i32
    return %c0_i32, %c0_i32_0 : i32, i32
  }
  func.func @transform_3(%arg0: i32) -> (i32, i32, i32) {
    %c0_i32 = arith.constant 0 : i32
    %c0_i32_0 = arith.constant 0 : i32
    %c0_i32_1 = arith.constant 0 : i32
    return %arg0, %c0_i32, %c0_i32_0 : i32, i32, i32
  }
}

</mosaic_0001>

<bundles_post_ra>
// kernel: tpu_custom_call.1
= control target key start
LH: loop header
LB: loop body
LE: loop exit
PB: predicated region body
PF: predicated region fallthrough
CT: control target
= control target key end

     0   :  { %8 = vsyncpa [#allocation3], 0  ;;  %s1125_s0 = inlined_call_operand.hbm [shape: f32[2,64,256], index: 0, kind: input, shape index: {}]   ;;  %s1126_s1 = inlined_call_operand.vmem [shape: f32[64,4], index: 1, kind: input, shape index: {}]   ;;  %s1127_s2 = inlined_call_operand.vmem [shape: f32[4,64], index: 2, kind: input, shape index: {}]   ;;  %s1128_s3 = inlined_call_operand.hbm [shape: f32[2,64,256], index: 3, kind: output, shape index: {}]  }
   0x1   :  { %10 = vsyncpa [#allocation3 + $0x1], 0 }
   0x2   :  { %11 = vsyncpa [#allocation4], 0 }
   0x3   :  { %13 = vsyncpa [#allocation4 + $0x1], 0  ;;  %s846_s12 = smov 0   ;;  %s848_s13 = smov 0  }
   0x4   :  { %s850_s14 = smov 0   ;;  %s852_s15 = smov 0  }
   0x5 LB: > { %s867_s16 = sadd.s32 4294967295, %s816_s15   ;;  %s613_s17 = sadd.s32 4294967294, %s816_s15   ;;  %s816_s15 = sphi %s852_s15, %s1143_s15   ;;  %s812_s14 = sphi %s850_s14, %s1142_s14   ;;  %s808_s13 = sphi %s848_s13, %s1141_s13   ;;  %s804_s12 = sphi %s846_s12, %s1140_s12  }
   0x6   : > { %s871_s18 = sadd.s32 1, %s816_s15   ;;  %s26_s19 = sadd.s32 1, %s812_s14 }
   0x7   : > { %s23_s20 = ssub.s32 %s816_s15, %s871_s18  ;;  %p33_p0 = scmp.ne.s32.totalorder %s812_s14, %s808_s13 }
   0x8   : > { %p24_p1 = scmp.eq.s32.totalorder %s23_s20, 0  ;;  %p34_p2 = scmp.eq.s32.totalorder %s816_s15, 0 }
   0x9   : > { %p39_p3 = scmp.ne.s32.totalorder %s808_s13, %s804_s12  ;;  %p40_p4 = scmp.eq.s32.totalorder %s867_s16, 0 }
   0xa   : > { %s883_s21 = scalar_select %p24_p1, %s812_s14, %s26_s19  }
   0xb   : > { %p885_p5 = por %p34_p2, %p33_p0  ;;  %p889_p6 = por %p40_p4, %p39_p3 }
   0xc   : > { %p105_p7 = scmp.eq.s32.totalorder %s867_s16, 1  ;;  %p111_p8 = scmp.eq.s32.totalorder %s613_s17, 1 }
   0xd   : > { %s1132_s23 = scalar_select %p889_p6, 1, 0 }
   0xe   : > { %p680_p10 = scmp.lt.s32.totalorder %s816_s15, 2  ;;  %p896_p11 = por %p105_p7, %p33_p0 }
   0xf   : > { %p900_p12 = por %p111_p8, %p39_p3  ;;  %s137_s26 = sand.u32 1, %s812_s14  }
  0x10   : > { %s1133_s24 = scalar_select %p896_p11, 1, 0 }
  0x11   : > { %s1134_s25 = scalar_select %p900_p12, 1, 0 }
  0x12   : > { %s631_s27 = sshll.u32 %s816_s15, 11  ;;  %s616_s28 = sshll.u32 %s137_s26, 7 }
  0x13   : > { %s909_s4 = scalar_lea.hbm %s1125_s0, %s631_s27  ;;  %s141_s5 = scalar_lea.vmem [#allocation2], %s616_s28 }
  0x14   : > { %s148_s6 = sshll.u32 %s141_s5, 4  ;;  %p913_p13 = pnand %p680_p10, %p885_p5  ;;  %s917_s6 = int_to_ptr.vmem [resolvable:$true] %s148_s6 }
  0x15   : > { %s919_s8 = scalar_lea.sflag [#allocation3], %s137_s26  ;;  %s724_s9 = scalar_lea.hbm %s909_s4, 2048 }
  0x16   : > { %p725_p0 = scmp.ne.s32.totalorder %s909_s4, %s724_s9  ;;  %p726_p1 = pneg %p913_p13 }
  0x17   : > { %s729_s17 = scalar_lea.hbm %s1125_s0, 4096  ;;  %p730_p4 = scmp.lt.s32.totalorder %s909_s4, %s1125_s0 }
  0x18   : > { %p727_p2 = pnand %p726_p1, %p725_p0  ;;  %p731_p5 = scmp.lt.s32.totalorder %s729_s17, %s724_s9 }
  0x1a   : > { %p728_p3 = pneg %p727_p2  ;;  %p732_p7 = por %p731_p5, %p730_p4 }
  0x1c   : > { %p733_p8 = pnand %p732_p7, %p728_p3 }
  0x1e   : > { %736 = shalt.err (!%p733_p8)
}
  0x1f   : > { %s737_s22 = scalar_lea.vmem %s917_s6, 2048  ;;  %s818_s26 = smov [#allocation2]  }
  0x20   : > { %p738_p10 = scmp.ne.s32.totalorder %s917_s6, %s737_s22  ;;  %s742_s27 = sshll.u32 %s818_s26, 4  ;;  %s743_s27 = int_to_ptr.vmem [resolvable:$false] %s742_s27 }
  0x21   : > { %s744_s28 = scalar_lea.vmem %s743_s27, 4096  ;;  %p745_p2 = scmp.lt.s32.totalorder %s917_s6, %s743_s27 }
  0x22   : > { %p740_p9 = pnand %p738_p10, %p726_p1  ;;  %p746_p12 = scmp.lt.s32.totalorder %s744_s28, %s737_s22 }
  0x24   : > { %p741_p0 = pneg %p740_p9  ;;  %p747_p11 = por %p746_p12, %p745_p2 }
  0x26   : > { %p748_p6 = pnand %p747_p11, %p741_p0 }
  0x28   : > { %751 = shalt.err (!%p748_p6)
}
  0x29   : > { %s819_s29 = smov 256   ;;  %s820_s30 = smov 16  }
  0x2a   : > { %675 = dma.hbm_to_vmem [thread:$0]  (!%p913_p13), %s909_s4, 2048, %s917_s6, %s919_s8, %s819_s29, %s819_s29, %s820_s30  }
  0x2b   : > { %p619_p9 = scmp.ge.s32.totalorder %s816_s15, 1  ;;  %p156_p1 = scmp.lt.s32.totalorder %s816_s15, 3 }
  0x2d   : > { %p157_p3 = pnand %p619_p9, %p156_p1 }
  0x2e   : > { %s943_s5 = sand.u32 (!%p157_p3), 1, %s808_s13   ;;  %p1136_p6 = scmp.ne.s32.totalorder (!%p157_p3), %s1132_s23, 0 }
  0x2f   : > { %160 = sbr.rel (%p157_p3) target bundleno = 779 (0x30b), region = 32  ;;  %s620_s9 = sshll.u32 (!%p157_p3), %s943_s5, 7 }
  0x30   : > { %s163_s10 = scalar_lea.sflag (!%p157_p3), [#allocation3], %s943_s5  ;;  %s166_s11 = scalar_lea.vmem (!%p157_p3), [#allocation2], %s620_s9 }
  0x34   : > { %795 = dma.done.wait (%p1136_p6), %s163_s10, 2048  }
  0x35   : > { %797 = vsyncadd (%p1136_p6), %s163_s10, 4294965248  ;;  %v953_v0 = vld [vmem:[%s166_s11] sm:$0xff]  ;;  %v955_v1 = vld [vmem:[%s166_s11 + $0x8] sm:$0xff]  ;;  %v821_v24 = vmov 0.0   ;;  %vm822_vm0 = vmmov 0   ;;  %v245_v33 = vlaneseq  ;;  %vm256_vm1 = vcmask 130112  }
  0x36   : > { %v957_v2 = vld [vmem:[%s166_s11 + $0x20] sm:$0xff]  ;;  %v205_v3 = vadd.f32 %v955_v1, %v953_v0  ;;  %v961_v4 = vld [vmem:[%s166_s11 + $0x28] sm:$0xff]  ;;  %v963_v5 = vld [vmem:[%s166_s11 + $0x10] sm:$0xff]  ;;  %644 = vmatprep.subr.mxu0 %v821_v24  ;;  %663 = vmatprep.subr.mxu1 %v821_v24  ;;  %vm263_vm2 = vcmask 195712   ;;  %vm270_vm3 = vcmask 261312   ;;  %vm277_vm4 = vcmask 326912  }
  0x37   : > { %v965_v6 = vld [vmem:[%s166_s11 + $0x18] sm:$0xff]  ;;  %v211_v7 = vadd.f32 %v961_v4, %v957_v2  ;;  %v969_v8 = vld [vmem:[%s166_s11 + $0x30] sm:$0xff]  ;;  %v977_v12 = vld [vmem:[%s166_s11 + $0x40] sm:$0xff]  ;;  %660 = vmatprep.mubr.msk.f32.mxu0 %vm822_vm0, %v821_v24  ;;  %665 = vmatprep.mubr.msk.f32.mxu1 %vm822_vm0, %v821_v24  ;;  %v246_v34 = vand.u32 127, %v245_v33  ;;  %v1025_v35 = vshrl.u32 %v245_v33, 7  ;;  %vm284_vm5 = vcmask 392512  }
  0x38   : > { %v971_v9 = vld [vmem:[%s166_s11 + $0x38] sm:$0xff]  ;;  %206 = vadd.xlane.f32.xlu0 %v205_v3  ;;  %v208_v10 = vadd.f32 %v965_v6, %v963_v5  ;;  %v979_v13 = vld [vmem:[%s166_s11 + $0x48] sm:$0xff]  ;;  %v981_v14 = vld [vmem:[%s166_s11 + $0x50] sm:$0xff]  ;;  %vm291_vm6 = vcmask 458112   ;;  %vm298_vm7 = vcmask 523712   ;;  %vm300_vm8 = vcmask 523264  }
  0x39   : > { %212 = vadd.xlane.f32.xlu1 %v211_v7  ;;  %v214_v11 = vadd.f32 %v971_v9, %v969_v8  ;;  %v983_v15 = vld [vmem:[%s166_s11 + $0x58] sm:$0xff]  ;;  %v217_v16 = vadd.f32 %v979_v13, %v977_v12  ;;  %v989_v18 = vld [vmem:[%s166_s11 + $0x60] sm:$0xff]  ;;  %v991_v19 = vld [vmem:[%s166_s11 + $0x68] sm:$0xff]  ;;  %v251_v36 = vadd.s32 4294967288, %v246_v34  ;;  %v258_v37 = vadd.s32 4294967280, %v246_v34  ;;  %s1045_s6 = scalar_lea.vmem [#allocation5], %s620_s9 }
  0x3a   : > { %v220_v17 = vadd.f32 %v983_v15, %v981_v14  ;;  %v993_v20 = vld [vmem:[%s166_s11 + $0x70] sm:$0xff]  ;;  %v995_v21 = vld [vmem:[%s166_s11 + $0x78] sm:$0xff]  ;;  %v223_v22 = vadd.f32 %v991_v19, %v989_v18  ;;  %v234_v27 = vld [vmem:[%s1126_s1 + $0x28] sm:$0xff]  ;;  %v265_v38 = vadd.s32 4294967272, %v246_v34  ;;  %v249_v40 = vsub.s32 %v246_v34, %v1025_v35  ;;  %s632_s9 = sshll.u32 %s867_s16, 11  ;;  %s540_s7 = sshll.u32 %s1045_s6, 4  ;;  %s1078_s7 = int_to_ptr.vmem [resolvable:$true] %s540_s7 }
  0x3b   : > { %v226_v23 = vadd.f32 %v995_v21, %v993_v20  ;;  %v236_v25 = vld [vmem:[%s1126_s1 + $0x38] sm:$0xff]  ;;  %v235_v26 = vld [vmem:[%s1126_s1 + $0x30] sm:$0xff]  ;;  %v233_v28 = vld [vmem:[%s1126_s1 + $0x20] sm:$0xff]  ;;  %v254_v42 = vsub.s32 %v251_v36, %v1025_v35  ;;  %v272_v43 = vadd.s32 4294967264, %v246_v34  ;;  %v261_v44 = vsub.s32 %v258_v37, %v1025_v35  ;;  %s1076_s19 = scalar_lea.hbm %s1128_s3, %s632_s9  ;;  %s527_s16 = scalar_lea.sflag [#allocation4], %s943_s5 }
  0x3c   : > { %209 = vadd.xlane.f32.xlu0 %v208_v10  ;;  %645 = vmatpush3.msra.mxu0 %v236_v25  ;;  %v232_v29 = vld [vmem:[%s1126_s1 + $0x18] sm:$0xff]  ;;  %v231_v30 = vld [vmem:[%s1126_s1 + $0x10] sm:$0xff]  ;;  %v230_v31 = vld [vmem:[%s1126_s1 + $0x8] sm:$0xff]  ;;  %v268_v45 = vsub.s32 %v265_v38, %v1025_v35  ;;  %v279_v46 = vadd.s32 4294967256, %v246_v34  ;;  %v286_v52 = vadd.s32 4294967248, %v246_v34  ;;  %v293_v56 = vadd.s32 4294967240, %v246_v34 }
  0x3d   : > { %215 = vadd.xlane.f32.xlu1 %v214_v11  ;;  %646 = vmatprep.subr.mxu0 %v821_v24  ;;  %v229_v32 = vld [vmem:[%s1126_s1] sm:$0xff]  ;;  %v275_v51 = vsub.s32 %v272_v43, %v1025_v35  ;;  %vm379_vm9 = vcmask 1043456   ;;  %vm375_vm10 = vcmask 31744   ;;  %v461_v36 = vsub.s32 0, %v1025_v35  ;;  %s752_s20 = scalar_lea.vmem %s1078_s7, 2048  ;;  %p1137_p12 = scmp.ne.s32.totalorder %s1133_s24, 0 }
  0x3e   : > { %647 = vmatpush3.msra.mxu0 %v235_v26  ;;  %v282_v55 = vsub.s32 %v279_v46, %v1025_v35  ;;  %v289_v63 = vsub.s32 %v286_v52, %v1025_v35  ;;  %v296_v7 = vsub.s32 %v293_v56, %v1025_v35  ;;  %v374_v26 = vld [vmem:[%s1127_s2] sm:$0xf]  ;;  %p753_p11 = scmp.ne.s32.totalorder %s1078_s7, %s752_s20  ;;  %s823_s22 = smov [#allocation5]  }
  0x3f   : > { %648 = vmatprep.subr.mxu0 %v821_v24  ;;  %664 = vmatpush3.msk.msra.mxu1 %vm379_vm9, %v374_v26  ;;  %s756_s26 = sshll.u32 %s823_s22, 4  ;;  %s757_s26 = int_to_ptr.vmem [resolvable:$false] %s756_s26 }
  0x40   : > { %218 = vadd.xlane.f32.xlu0 %v217_v16  ;;  %649 = vmatpush3.msra.mxu0 %v234_v27  ;;  %p754_p13 = pnand %p753_p11, %p1137_p12  ;;  %s758_s27 = scalar_lea.vmem %s757_s26, 4096 }
  0x41   : > { %221 = vadd.xlane.f32.xlu1 %v220_v17  ;;  %650 = vmatprep.subr.mxu0 %v821_v24  ;;  %p759_p5 = scmp.lt.s32.totalorder %s1078_s7, %s757_s26  ;;  %p760_p7 = scmp.lt.s32.totalorder %s758_s27, %s752_s20 }
  0x42   : > { %651 = vmatpush3.msra.mxu0 %v233_v28  ;;  %p755_p4 = pneg %p754_p13 }
  0x43   : > { %652 = vmatprep.subr.mxu0 %v821_v24  ;;  %p761_p8 = por %p760_p7, %p759_p5 }
  0x44   : > { %224 = vadd.xlane.f32.xlu0 %v223_v22  ;;  %653 = vmatpush3.msra.mxu0 %v232_v29 }
  0x45   : > { %227 = vadd.xlane.f32.xlu1 %v226_v23  ;;  %654 = vmatprep.subr.mxu0 %v821_v24  ;;  %p762_p10 = pnand %p761_p8, %p755_p4 }
  0x46   : > { %655 = vmatpush3.msra.mxu0 %v231_v30 }
  0x47   : > { %656 = vmatprep.subr.mxu0 %v821_v24 }
  0x48   : > { %657 = vmatpush3.msra.mxu0 %v230_v31 }
  0x49   : > { %658 = vmatprep.subr.mxu0 %v821_v24 }
  0x4a   : > { %659 = vmatpush3.msra.mxu0 %v229_v32 }
  0xc1   : > { %v207_v39 = vpop.xlane.xlu0 %206 }
  0xc2   : > { %v213_v41 = vpop.xlane.xlu1 %212  ;;  %v250_v48 = vrot.slane %v207_v39, %v249_v40 }
  0xc3   : > { %v262_v53 = vrot.slane %v213_v41, %v261_v44 }
  0xc5   : > { %v210_v47 = vpop.xlane.xlu0 %209 }
  0xc6   : > { %v255_v49 = vrot.slane %v210_v47, %v254_v42  ;;  %v216_v50 = vpop.xlane.xlu1 %215 }
  0xc7   : > { %v269_v54 = vrot.slane %v216_v50, %v268_v45 }
  0xc8   : > { %v257_v57 = vsel %vm256_vm1, %v255_v49, %v250_v48 }
  0xc9   : > { %v264_v58 = vsel %vm263_vm2, %v262_v53, %v257_v57  ;;  %v219_v59 = vpop.xlane.xlu0 %218 }
  0xca   : > { %v271_v60 = vsel %vm270_vm3, %v269_v54, %v264_v58  ;;  %v276_v61 = vrot.slane %v219_v59, %v275_v51  ;;  %v222_v62 = vpop.xlane.xlu1 %221 }
  0xcb   : > { %v283_v3 = vrot.slane %v222_v62, %v282_v55 }
  0xcc   : > { %v278_v10 = vsel %vm277_vm4, %v276_v61, %v271_v60 }
  0xcd   : > { %v225_v11 = vpop.xlane.xlu0 %224  ;;  %v285_v22 = vsel %vm284_vm5, %v283_v3, %v278_v10 }
  0xce   : > { %v290_v16 = vrot.slane %v225_v11, %v289_v63  ;;  %v228_v17 = vpop.xlane.xlu1 %227 }
  0xcf   : > { %v297_v23 = vrot.slane %v228_v17, %v296_v7 }
  0xd0   : > { %v292_v24 = vsel %vm291_vm6, %v290_v16, %v285_v22 }
  0xd1   : > { %v299_v25 = vsel %vm298_vm7, %v297_v23, %v292_v24 }
  0xd2   : > { %661 = vmatmul.mubr.msk.f32.vlgmr.msra.gmra.mxu0 %vm300_vm8, %v299_v25 }
 0x192   : > { %v369_v27 = vpop.f32.mrf.mxu0 }
 0x193   : > { %v373_v28 = vmax.f32 %v369_v27, 0.0 }
 0x194   : > { %v662_v29 = vpop.f32.mrf.mxu0 }
 0x195   : > { %666 = vmatmul.mubr.msk.f32.vlgmr.msra.gmra.mxu1 %vm375_vm10, %v373_v28 }
 0x255   : > { %v449_v30 = vpop.f32.mrf.mxu1 }
 0x256   : > { %v625_v31 = vmul.f32 -1.442695, %v449_v30 }
 0x257   : > { %v667_v32 = vpop.f32.mrf.mxu1 }
 0x258   : > { %720 = vpow2.f32 %v625_v31 }
 0x265   : > { %v721_v33 = vpop.eup %720 }
 0x266   : > { %v456_v34 = vadd.f32 1.0, %v721_v33 }
 0x268   : > { %722 = vrcp.f32 %v456_v34 }
 0x275   : > { %v723_v37 = vpop.eup %722 }
 0x276   : > { %v462_v38 = vrot.slane %v723_v37, %v461_v36 }
 0x278   : > { %468 = vbcast.lane.b32.xlu1 %v462_v38, 264  ;;  %464 = vbcast.lane.b32.xlu0 %v462_v38, 256 }
 0x27c   : > { %472 = vbcast.lane.b32.xlu1 %v462_v38, 272  ;;  %480 = vbcast.lane.b32.xlu0 %v462_v38, 288 }
 0x280   : > { %476 = vbcast.lane.b32.xlu1 %v462_v38, 280  ;;  %488 = vbcast.lane.b32.xlu0 %v462_v38, 304 }
 0x284   : > { %484 = vbcast.lane.b32.xlu1 %v462_v38, 296 }
 0x288   : > { %492 = vbcast.lane.b32.xlu1 %v462_v38, 312 }
 0x2ea   : > { %v469_v39 = vpop.permute.xlu1 %468  ;;  %v465_v40 = vpop.permute.xlu0 %464 }
 0x2eb   : > { %v496_v41 = vmul.f32 %v469_v39, %v963_v5  ;;  %v497_v42 = vmul.f32 %v469_v39, %v965_v6  ;;  %v494_v43 = vmul.f32 %v465_v40, %v953_v0  ;;  %v495_v35 = vmul.f32 %v465_v40, %v955_v1 }
 0x2ed   : > { %512 = vst [vmem:[%s1045_s6 + $0x10] sm:$0xff] %v496_v41  ;;  %513 = vst [vmem:[%s1045_s6 + $0x18] sm:$0xff] %v497_v42 }
 0x2ee   : > { %510 = vst [vmem:[%s1045_s6] sm:$0xff] %v494_v43  ;;  %511 = vst [vmem:[%s1045_s6 + $0x8] sm:$0xff] %v495_v35  ;;  %v473_v5 = vpop.permute.xlu1 %472  ;;  %v481_v0 = vpop.permute.xlu0 %480 }
 0x2ef   : > { %v498_v1 = vmul.f32 %v473_v5, %v957_v2  ;;  %v499_v6 = vmul.f32 %v473_v5, %v961_v4  ;;  %v502_v44 = vmul.f32 %v481_v0, %v977_v12  ;;  %v503_v45 = vmul.f32 %v481_v0, %v979_v13 }
 0x2f1   : > { %514 = vst [vmem:[%s1045_s6 + $0x20] sm:$0xff] %v498_v1  ;;  %515 = vst [vmem:[%s1045_s6 + $0x28] sm:$0xff] %v499_v6 }
 0x2f2   : > { %518 = vst [vmem:[%s1045_s6 + $0x40] sm:$0xff] %v502_v44  ;;  %519 = vst [vmem:[%s1045_s6 + $0x48] sm:$0xff] %v503_v45  ;;  %v477_v46 = vpop.permute.xlu1 %476  ;;  %v489_v47 = vpop.permute.xlu0 %488 }
 0x2f3   : > { %v500_v2 = vmul.f32 %v477_v46, %v969_v8  ;;  %v501_v48 = vmul.f32 %v477_v46, %v971_v9  ;;  %v506_v4 = vmul.f32 %v489_v47, %v989_v18  ;;  %v507_v12 = vmul.f32 %v489_v47, %v991_v19 }
 0x2f5   : > { %516 = vst [vmem:[%s1045_s6 + $0x30] sm:$0xff] %v500_v2  ;;  %517 = vst [vmem:[%s1045_s6 + $0x38] sm:$0xff] %v501_v48 }
 0x2f6   : > { %522 = vst [vmem:[%s1045_s6 + $0x60] sm:$0xff] %v506_v4  ;;  %523 = vst [vmem:[%s1045_s6 + $0x68] sm:$0xff] %v507_v12  ;;  %v485_v13 = vpop.permute.xlu1 %484 }
 0x2f7   : > { %v504_v49 = vmul.f32 %v485_v13, %v981_v14  ;;  %v505_v50 = vmul.f32 %v485_v13, %v983_v15 }
 0x2f9   : > { %520 = vst [vmem:[%s1045_s6 + $0x50] sm:$0xff] %v504_v49  ;;  %521 = vst [vmem:[%s1045_s6 + $0x58] sm:$0xff] %v505_v50 }
 0x2fa   : > { %v493_v8 = vpop.permute.xlu1 %492 }
 0x2fb   : > { %v508_v9 = vmul.f32 %v493_v8, %v993_v20  ;;  %v509_v14 = vmul.f32 %v493_v8, %v995_v21 }
 0x2fd   : > { %524 = vst [vmem:[%s1045_s6 + $0x70] sm:$0xff] %v508_v9  ;;  %525 = vst [vmem:[%s1045_s6 + $0x78] sm:$0xff] %v509_v14 }
 0x2fe   : > { %765 = shalt.err (!%p762_p10)
}
 0x2ff   : > { %s766_s28 = scalar_lea.hbm %s1076_s19, 2048  ;;  %s770_s10 = scalar_lea.hbm %s1128_s3, 4096 }
 0x300   : > { %p767_p0 = scmp.ne.s32.totalorder %s1076_s19, %s766_s28  ;;  %p771_p1 = scmp.lt.s32.totalorder %s1076_s19, %s1128_s3 }
 0x301   : > { %p772_p3 = scmp.lt.s32.totalorder %s770_s10, %s766_s28 }
 0x302   : > { %p768_p2 = pnand %p767_p0, %p1137_p12 }
 0x303   : > { %p773_p6 = por %p772_p3, %p771_p1 }
 0x304   : > { %p769_p9 = pneg %p768_p2 }
 0x306   : > { %p774_p11 = pnand %p773_p6, %p769_p9 }
 0x308   : > { %777 = shalt.err (!%p774_p11)
}
 0x309   : > { %s824_s4 = smov 256   ;;  %s825_s6 = smov 16  }
 0x30a   : > { %670 = dma.vmem_to_hbm [thread:$0]  (%p1137_p12), %s1078_s7, 2048, %s1076_s19, %s527_s16, %s824_s4, %s824_s4, %s825_s6  }
 0x30b PF: > { %s555_s9 = sand.u32 1, %s804_s12   ;;  %p1138_p13 = scmp.ne.s32.totalorder %s1134_s25, 0 }
 0x30c   : > { %p1139_p4 = scmp.ge.s32.totalorder %s816_s15, 2  ;;  %s556_s8 = scalar_lea.sflag [#allocation4], %s555_s9 }
 0x30e   : > { %p677_p5 = pnand %p1139_p4, %p1138_p13 }
 0x310   : > { %p678_p7 = pneg %p677_p5 }
 0x312   : > { %799 = dma.done.wait (%p678_p7), %s556_s8, 2048  }
 0x313   : > { %801 = vsyncadd (%p678_p7), %s556_s8, 4294965248  ;;  %p16_p8 = scmp.ge.s32.totalorder %s871_s18, 4   ;;  %s1140_s12 = smov %s808_s13 }
 0x314   : > { %s1141_s13 = smov %s812_s14  ;;  %s1142_s14 = smov %s883_s21 }
 0x315   : > { %s1143_s15 = smov %s871_s18  ;;  %18 = sbr.rel (!%p16_p8) target bundleno = 5 (0x5), region = 77 }
 0x31a   :  { %561 = vsyncpa [#allocation3], 1 }
 0x31b   :  { %563 = vsyncpa [#allocation3 + $0x1], 1 }
 0x31c   :  { %564 = vsyncpa [#allocation4], 1 }
 0x31d   :  { %566 = vsyncpa [#allocation4 + $0x1], 1 }

</bundles_post_ra>
